<compile_context>
chip_gen: v5e
topology: v5e:2x2
jax: 0.10.0
libtpu: 0.0.40
codegen_flags: <defaults>
</compile_context>

<pallas_src>
import functools

import jax
import jax.numpy as jnp
from jax import lax
from jax.experimental import pallas as pl
from jax.experimental.pallas import tpu as pltpu


_LANES = 128
_MAX_TILE_R = 4096                      # (4096,128) f32 block = 2 MiB / buffer
_VMEM_LIMIT_BYTES = 32 * 1024 * 1024    # 2x(in)+2x(out)=8 MiB + f32 temporaries


def _round_up(a: int, b: int) -> int:
    return ((a + b - 1) // b) * b


@functools.lru_cache(maxsize=1)
def _has_bf16_vpu() -> bool:
    """True on generations with a bf16 VPU/EUP path (v6e, v7x)."""
    try:
        kind = jax.devices()[0].device_kind.lower()
    except Exception:  # pragma: no cover - conservative fallback
        return False
    return any(tag in kind for tag in ("v6", "v7", "tpu7"))


def _choose_tile(rows: int) -> int:
    """Pick a sublane-aligned block height.

    Rules (from the perf review):
      - as large as possible, capped at _MAX_TILE_R (2 MiB f32 block);
      - at least 2 grid steps (ideally an even count) for any non-trivial
        tensor so the "parallel" grid axis can split across v7x's 2 TCs;
      - multiple of 8 (sublane) unless it equals the full row count.
    """
    if rows <= 8:
        return rows  # single (possibly partial) block; block == full dim is legal
    n_steps = max(2, pl.cdiv(rows, _MAX_TILE_R))
    n_steps = _round_up(n_steps, 2)          # balanced 2-way TC split
    return min(_MAX_TILE_R, _round_up(pl.cdiv(rows, n_steps), 8))


def _serf_kernel(x_ref, o_ref, *, short_erf: bool):
    x = x_ref[...]
    xf = x.astype(jnp.float32)
    # Numerically stable softplus in f32 (exp/log1p run on the EUP):
    #   log(1 + exp(x)) = max(x, 0) + log1p(exp(-|x|))
    sp = jnp.maximum(xf, 0.0) + jnp.log1p(jnp.exp(-jnp.abs(xf)))
    if short_erf:
        # bf16 I/O on bf16-capable chips: the full f32 erf polynomial would be
        # the binding VALU slot once HBM traffic halves, so use the short
        # tanh-form approximation  erf(z) ~ tanh(2/sqrt(pi)*z + c3*z^3)
        # (|error| < ~2e-3, z = softplus(x) >= 0).  Cubic runs in packed bf16
        # vregs; tanh goes to the EUP (free slot, f32 for safe lowering).
        z = sp.astype(jnp.bfloat16)
        t = 1.1283791671 * z + 0.1009066569 * (z * z * z)
        erf_z = jnp.tanh(t.astype(jnp.float32)).astype(o_ref.dtype)
        o_ref[...] = x.astype(o_ref.dtype) * erf_z
    else:
        # Exact path (f32 I/O, and all dtypes on v5e which has no bf16 VPU).
        o_ref[...] = (xf * lax.erf(sp)).astype(o_ref.dtype)


def _serf_2d(x2d: jax.Array) -> jax.Array:
    """Run the kernel on a lane-dense [rows, 128] slab."""
    rows = x2d.shape[0]
    dtype = x2d.dtype
    tile_r = _choose_tile(rows)
    grid = (pl.cdiv(rows, tile_r),)
    short_erf = (dtype == jnp.bfloat16) and _has_bf16_vpu()

    n_elems = rows * _LANES
    cost = pl.CostEstimate(
        flops=25 * n_elems,            # softplus arith + erf polynomial + mul
        transcendentals=3 * n_elems,   # exp, log1p (+ tanh on the short path)
        bytes_accessed=2 * n_elems * x2d.dtype.itemsize,
    )

    return pl.pallas_call(
        functools.partial(_serf_kernel, short_erf=short_erf),
        out_shape=jax.ShapeDtypeStruct((rows, _LANES), dtype),
        grid=grid,
        in_specs=[pl.BlockSpec((tile_r, _LANES), lambda i: (i, 0))],
        out_specs=pl.BlockSpec((tile_r, _LANES), lambda i: (i, 0)),
        compiler_params=pltpu.CompilerParams(
            dimension_semantics=("parallel",),
            vmem_limit_bytes=_VMEM_LIMIT_BYTES,
        ),
        cost_estimate=cost,
    )(x2d)


def _serf_plain(x: jax.Array) -> jax.Array:
    """Plain-JAX Serf for the <128-element ragged tail."""
    xf = x.astype(jnp.float32)
    sp = jnp.maximum(xf, 0.0) + jnp.log1p(jnp.exp(-jnp.abs(xf)))
    return (xf * lax.erf(sp)).astype(x.dtype)


def serf(x: jax.Array) -> jax.Array:
    """Elementwise Serf activation, computed in a Pallas TPU kernel."""
    orig_shape = x.shape
    n = x.size
    if n == 0:
        return x

    if n % _LANES == 0:
        # Common conv-activation case: free lane-dense reshape, one HBM
        # read + one HBM write inside the kernel.
        return _serf_2d(x.reshape(-1, _LANES)).reshape(orig_shape)

    # Ragged path: kernel on the 128-aligned prefix, tail (<128 elems) in
    # plain JAX — no pad + post-slice HBM round trips.
    flat = x.reshape(-1)
    n_main = (n // _LANES) * _LANES
    if n_main == 0:
        return _serf_plain(flat).reshape(orig_shape)
    main = _serf_2d(flat[:n_main].reshape(-1, _LANES)).reshape(-1)
    tail = _serf_plain(flat[n_main:])
    return jnp.concatenate([main, tail]).reshape(orig_shape)


def serf_reference(x: jax.Array) -> jax.Array:
    """Plain-JAX reference of the PyTorch forward (naive form)."""
    xf = x.astype(jnp.float32)
    return (xf * lax.erf(jnp.log1p(jnp.exp(xf)))).astype(x.dtype)


if __name__ == "__main__":
    key = jax.random.PRNGKey(0)

    # NCHW input, small shapes consistent with a conv-net activation.
    x = jax.random.normal(key, (2, 4, 16, 16), dtype=jnp.float32)
    y = jax.block_until_ready(serf(x))
    y_ref = serf_reference(x)
    assert y.shape == x.shape and y.dtype == x.dtype
    assert jnp.allclose(y, y_ref, atol=1e-5, rtol=1e-5)

    # Ragged / non-multiple-of-128 path.
    x_odd = 4.0 * jax.random.normal(jax.random.PRNGKey(1), (3, 5, 7, 3),
                                    dtype=jnp.float32)
    y_odd = jax.block_until_ready(serf(x_odd))
    assert jnp.allclose(y_odd, serf_reference(x_odd), atol=1e-5, rtol=1e-5)

    # Native bf16 HBM I/O path (short-erf variant on v6e/v7x, exact on v5e).
    x_bf16 = jax.random.normal(jax.random.PRNGKey(2), (2, 4, 16, 16),
                               dtype=jnp.bfloat16)
    y_bf16 = jax.block_until_ready(serf(x_bf16))
    assert y_bf16.dtype == jnp.bfloat16
    assert jnp.allclose(y_bf16.astype(jnp.float32),
                        serf_reference(x_bf16).astype(jnp.float32),
                        atol=2e-2, rtol=2e-2)

    print("KERNEL_OK")
</pallas_src>

<mosaic_0001>
module attributes {stable_mosaic.version = 11 : i64} {
  func.func @_serf_kernel(%arg0: i32, %arg1: memref<8x128xf32, #tpu.memory_space<vmem>>, %arg2: memref<8x128xf32, #tpu.memory_space<vmem>>) attributes {dimension_semantics = [#tpu.dimension_semantics<parallel>], iteration_bounds = array<i64: 2>, scalar_prefetch = 0 : i64, scratch_operands = 0 : i64, tpu.core_type = #tpu.core_type<tc>, window_params = [{transform_indices = @transform_0, window_bounds = array<i64: 8, 128>}, {transform_indices = @transform_1, window_bounds = array<i64: 8, 128>}]} {
    %c0 = arith.constant 0 : index
    %c0_0 = arith.constant 0 : index
    %0 = vector.load %arg1[%c0, %c0_0] : memref<8x128xf32, #tpu.memory_space<vmem>>, vector<8x128xf32>
    %cst = arith.constant 0.000000e+00 : f32
    %1 = vector.broadcast %cst : f32 to vector<8x128xf32>
    %2 = arith.maximumf %0, %1 : vector<8x128xf32>
    %3 = math.absf %0 : vector<8x128xf32>
    %cst_1 = arith.constant 0.000000e+00 : f32
    %4 = vector.broadcast %cst_1 : f32 to vector<8x128xf32>
    %5 = arith.subf %4, %3 : vector<8x128xf32>
    %6 = math.exp %5 : vector<8x128xf32>
    %7 = math.log1p %6 : vector<8x128xf32>
    %8 = arith.addf %2, %7 : vector<8x128xf32>
    %9 = math.erf %8 : vector<8x128xf32>
    %10 = arith.mulf %0, %9 : vector<8x128xf32>
    %c0_2 = arith.constant 0 : index
    %c0_3 = arith.constant 0 : index
    %11 = vector.load %arg2[%c0_2, %c0_3] : memref<8x128xf32, #tpu.memory_space<vmem>>, vector<8x128xf32>
    tpu.vector_store %arg2[%c0_2, %c0_3], %10 {strides = array<i32>} : memref<8x128xf32, #tpu.memory_space<vmem>>, vector<8x128xf32>,
    return
  }
  func.func @transform_0(%arg0: i32) -> (i32, i32) {
    %c0_i32 = arith.constant 0 : i32
    %c0_i32_0 = arith.constant 0 : i32
    return %arg0, %c0_i32 : i32, i32
  }
  func.func @transform_1(%arg0: i32) -> (i32, i32) {
    %c0_i32 = arith.constant 0 : i32
    %c0_i32_0 = arith.constant 0 : i32
    return %arg0, %c0_i32 : i32, i32
  }
}

</mosaic_0001>

<bundles_post_ra>
// kernel: tpu_custom_call.1
= control target key start
LH: loop header
LB: loop body
LE: loop exit
PB: predicated region body
PF: predicated region fallthrough
CT: control target
= control target key end

     0   :  { %6 = vsyncpa [#allocation3], 0  ;;  %s587_s0 = inlined_call_operand.hbm [shape: f32[16,128], index: 0, kind: input, shape index: {}]   ;;  %s588_s1 = inlined_call_operand.hbm [shape: f32[16,128], index: 1, kind: output, shape index: {}]  }
   0x1   :  { %8 = vsyncpa [#allocation3 + $0x1], 0 }
   0x2   :  { %9 = vsyncpa [#allocation4], 0 }
   0x3   :  { %11 = vsyncpa [#allocation4 + $0x1], 0  ;;  %s451_s6 = smov 0   ;;  %s453_s7 = smov 0  }
   0x4   :  { %s455_s8 = smov 0   ;;  %s457_s9 = smov 0  }
   0x5 LB: > { %s472_s10 = sadd.s32 4294967295, %s439_s9   ;;  %s278_s11 = sadd.s32 4294967294, %s439_s9   ;;  %s439_s9 = sphi %s457_s9, %s598_s9   ;;  %s435_s8 = sphi %s455_s8, %s597_s8   ;;  %s431_s7 = sphi %s453_s7, %s596_s7   ;;  %s427_s6 = sphi %s451_s6, %s595_s6  }
   0x6   : > { %s476_s12 = sadd.s32 1, %s439_s9   ;;  %s24_s13 = sadd.s32 1, %s435_s8 }
   0x7   : > { %s21_s14 = ssub.s32 %s439_s9, %s476_s12  ;;  %p31_p0 = scmp.ne.s32.totalorder %s435_s8, %s431_s7 }
   0x8   : > { %p22_p1 = scmp.eq.s32.totalorder %s21_s14, 0  ;;  %p32_p2 = scmp.eq.s32.totalorder %s439_s9, 0 }
   0x9   : > { %p37_p3 = scmp.ne.s32.totalorder %s431_s7, %s427_s6  ;;  %p38_p4 = scmp.eq.s32.totalorder %s472_s10, 0 }
   0xa   : > { %s488_s15 = scalar_select %p22_p1, %s435_s8, %s24_s13  }
   0xb   : > { %p490_p5 = por %p32_p2, %p31_p0  ;;  %p494_p6 = por %p38_p4, %p37_p3 }
   0xc   : > { %p61_p7 = scmp.eq.s32.totalorder %s472_s10, 1  ;;  %p67_p8 = scmp.eq.s32.totalorder %s278_s11, 1 }
   0xd   : > { %p303_p10 = scmp.lt.s32.totalorder %s439_s9, 2  ;;  %s87_s20 = sand.u32 1, %s435_s8  }
   0xe   : > { %p501_p11 = por %p61_p7, %p31_p0  ;;  %p505_p12 = por %p67_p8, %p37_p3 }
   0xf   : > { %s282_s21 = sshll.u32 %s439_s9, 3  ;;  %s281_s22 = sshll.u32 %s87_s20, 3 }
  0x10   : > { %s95_s25 = scalar_lea.hbm %s587_s0, %s282_s21  ;;  %s91_s27 = scalar_lea.vmem [#allocation2], %s281_s22 }
  0x11   : > { %s97_s26 = sshll.u32 %s95_s25, 4  ;;  %s99_s28 = sshll.u32 %s91_s27, 4  ;;  %s98_s26 = int_to_ptr.hbm [resolvable:$true] %s97_s26  ;;  %s100_s28 = int_to_ptr.vmem [resolvable:$true] %s99_s28 }
  0x12   : > { %p516_p13 = pnand %p303_p10, %p490_p5  ;;  %p283_p0 = scmp.ge.s32.totalorder %s439_s9, 1 }
  0x13   : > { %p104_p1 = scmp.lt.s32.totalorder %s439_s9, 3  ;;  %s88_s30 = scalar_lea.sflag [#allocation3], %s87_s20 }
  0x14   : > { %s343_s2 = sshra.s32 %s98_s26, 4  ;;  %p347_p3 = pneg %p516_p13  ;;  %s344_s2 = int_to_ptr.hbm [resolvable:$true] %s343_s2 }
  0x15   : > { %s345_s3 = scalar_lea.hbm %s344_s2, 8  ;;  %s350_s11 = scalar_lea.hbm %s587_s0, 16 }
  0x16   : > { %p346_p2 = scmp.ne.s32.totalorder %s344_s2, %s345_s3  ;;  %p351_p5 = scmp.lt.s32.totalorder %s344_s2, %s587_s0 }
  0x17   : > { %p352_p8 = scmp.lt.s32.totalorder %s350_s11, %s345_s3 }
  0x18   : > { %p348_p4 = pnand %p347_p3, %p346_p2 }
  0x19   : > { %p353_p10 = por %p352_p8, %p351_p5 }
  0x1a   : > { %p349_p7 = pneg %p348_p4 }
  0x1c   : > { %p354_p9 = pnand %p353_p10, %p349_p7 }
  0x1e   : > { %357 = shalt.err (!%p354_p9)
}
  0x1f   : > { %298 = dma.hbm_to_vmem [thread:$0]  (!%p516_p13), %s98_s26, 128, %s100_s28, %s88_s30  }
  0x20   : > { %p105_p2 = pnand %p283_p0, %p104_p1 }
  0x21   : > { %s537_s16 = sand.u32 (!%p105_p2), 1, %s431_s7  }
  0x22   : > { %108 = sbr.rel (%p105_p2) target bundleno = 118 (0x76), region = 24  ;;  %s284_s20 = sshll.u32 (!%p105_p2), %s537_s16, 3 }
  0x23   : > { %s111_s21 = scalar_lea.sflag (!%p105_p2), [#allocation3], %s537_s16  ;;  %s114_s22 = scalar_lea.vmem (!%p105_p2), [#allocation2], %s284_s20 }
  0x27   : > { %418 = dma.done.wait (%p494_p6), %s111_s21, 128  }
  0x28   : > { %420 = vsyncadd (%p494_p6), %s111_s21, 4294967168  ;;  %v547_v0 = vld [vmem:[%s114_s22] sm:$0xff]  ;;  %s288_s17 = sshll.u32 %s472_s10, 3  ;;  %s133_s26 = scalar_lea.vmem [#allocation5], %s284_s20 }
  0x29   : > { %v136_v1 = vand.u32 2147483647, %v547_v0  ;;  %v135_v11 = vmax.f32 %v547_v0, 0.0  ;;  %s203_s25 = scalar_lea.hbm %s588_s1, %s288_s17  ;;  %s205_s27 = sshll.u32 %s133_s26, 4  ;;  %s206_s27 = int_to_ptr.vmem [resolvable:$true] %s205_s27 }
  0x2a   : > { %s207_s28 = sshll.u32 %s203_s25, 4  ;;  %s193_s10 = scalar_lea.sflag [#allocation4], %s537_s16  ;;  %s208_s28 = int_to_ptr.hbm [resolvable:$true] %s207_s28 }
  0x2b   : > { %v137_v2 = vsub.f32 0.0, %v136_v1  ;;  %s387_s29 = sshra.s32 %s208_s28, 4  ;;  %s393_s4 = scalar_lea.hbm %s588_s1, 16  ;;  %s388_s29 = int_to_ptr.hbm [resolvable:$true] %s387_s29 }
  0x2c   : > { %s389_s30 = scalar_lea.hbm %s388_s29, 8  ;;  %p394_p0 = scmp.lt.s32.totalorder %s388_s29, %s588_s1 }
  0x2d   : > { %v138_v3 = vmul.f32 1.442695, %v137_v2  ;;  %p390_p6 = scmp.ne.s32.totalorder %s388_s29, %s389_s30  ;;  %p395_p1 = scmp.lt.s32.totalorder %s393_s4, %s389_s30 }
  0x2f   : > { %337 = vpow2.f32 %v138_v3  ;;  %p391_p9 = pnand %p390_p6, %p501_p11  ;;  %p396_p3 = por %p395_p1, %p394_p0 }
  0x31   : > { %p392_p13 = pneg %p391_p9 }
  0x33   : > { %p397_p4 = pnand %p396_p3, %p392_p13 }
  0x35   : > { %v338_v4 = vpop.eup %337 }
  0x36   : > { %v140_v5 = vadd.f32 1.0, %v338_v4  ;;  %v143_v6 = vmul.f32 -0.5, %v338_v4  ;;  %v146_v8 = vand.u32 2147483647, %v338_v4 }
  0x38   : > { %339 = vlog2.f32 %v140_v5  ;;  %v144_v7 = vadd.f32 1.0, %v143_v6  ;;  %vm147_vm0 = vcmp.lt.f32.partialorder %v146_v8, 0.0004427343 }
  0x3a   : > { %v145_v9 = vmul.f32 %v338_v4, %v144_v7 }
  0x3e   : > { %v340_v10 = vpop.eup %339 }
  0x3f   : > { %v142_v12 = vmul.f32 0.6931472, %v340_v10 }
  0x41   : > { %v148_v13 = vsel %vm147_vm0, %v145_v9, %v142_v12 }
  0x42   : > { %v149_v14 = vadd.f32 %v148_v13, %v135_v11 }
  0x44   : > { %v150_v15 = vmul.f32 %v149_v14, %v149_v14 }
  0x46   : > { %v151_v16 = vmin.f32 %v150_v15, 16.0 }
  0x48   : > { %v152_v17 = vmul.f32 2.1237322e-06, %v151_v16  ;;  %v163_v18 = vmul.f32 3.8918573e-05, %v151_v16 }
  0x4a   : > { %v153_v19 = vadd.f32 0.00028619796, %v152_v17  ;;  %v164_v20 = vadd.f32 0.001143296, %v163_v18 }
  0x4c   : > { %v154_v21 = vmul.f32 %v153_v19, %v151_v16  ;;  %v165_v22 = vmul.f32 %v164_v20, %v151_v16 }
  0x4e   : > { %v155_v23 = vadd.f32 0.0036580483, %v154_v21  ;;  %v166_v24 = vadd.f32 0.014752088, %v165_v22 }
  0x50   : > { %v156_v25 = vmul.f32 %v155_v23, %v151_v16  ;;  %v167_v26 = vmul.f32 %v166_v24, %v151_v16 }
  0x52   : > { %v168_v27 = vadd.f32 0.112945676, %v167_v26  ;;  %v157_v28 = vadd.f32 0.05243302, %v156_v25 }
  0x54   : > { %v169_v29 = vmul.f32 %v168_v27, %v151_v16  ;;  %v158_v31 = vmul.f32 %v157_v28, %v151_v16 }
  0x56   : > { %v170_v30 = vadd.f32 0.4994258, %v169_v29  ;;  %v159_v34 = vadd.f32 0.18741608, %v158_v31 }
  0x58   : > { %v171_v32 = vmul.f32 %v170_v30, %v151_v16  ;;  %v160_v35 = vmul.f32 %v159_v34, %v151_v16 }
  0x5a   : > { %v172_v33 = vadd.f32 1.0, %v171_v32  ;;  %v161_v38 = vadd.f32 1.1283791, %v160_v35 }
  0x5c   : > { %341 = vrcp.f32 %v172_v33  ;;  %v184_v39 = vand.u32 2147483648, %v172_v33  ;;  %vm178_vm1 = vweird.f32 %v172_v33  ;;  %v182_v41 = vand.u32 2147483647, %v172_v33 }
  0x5d   : > { %v162_v44 = vmul.f32 %v161_v38, %v149_v14 }
  0x5e   : > { %v185_v43 = vor.u32 1.1754944e-38, %v184_v39  ;;  %vm183_vm4 = vcmp.eq.f32.partialorder %v182_v41, 8.507059e+37 }
  0x62   : > { %v342_v36 = vpop.eup %341 }
  0x63   : > { %v174_v37 = vmul.f32 %v342_v36, %v172_v33  ;;  %vm179_vm2 = vweird.f32 %v342_v36 }
  0x64   : > { %vm180_vm3 = vmor %vm178_vm1, %vm179_vm2 }
  0x65   : > { %v175_v40 = vsub.f32 1.0, %v174_v37 }
  0x67   : > { %v176_v42 = vmul.f32 %v342_v36, %v175_v40 }
  0x69   : > { %v177_v45 = vadd.f32 %v342_v36, %v176_v42 }
  0x6b   : > { %v181_v46 = vsel %vm180_vm3, %v342_v36, %v177_v45 }
  0x6c   : > { %v186_v47 = vsel %vm183_vm4, %v185_v43, %v181_v46 }
  0x6d   : > { %v187_v48 = vmul.f32 %v186_v47, %v162_v44 }
  0x6f   : > { %v286_v49 = vclamps-f32 %v187_v48, 1.0 }
  0x71   : > { %v190_v50 = vmul.f32 %v286_v49, %v547_v0 }
  0x73   : > { %191 = vst [vmem:[%s133_s26] sm:$0xff] %v190_v50 }
  0x74   : > { %400 = shalt.err (!%p397_p4)
}
  0x75   : > { %293 = dma.vmem_to_hbm [thread:$0]  (%p501_p11), %s206_s27, 128, %s208_s28, %s193_s10  }
  0x76 PF: > { %s219_s13 = sand.u32 1, %s427_s6   ;;  %p594_p7 = scmp.ge.s32.totalorder %s439_s9, 2 }
  0x77   : > { %s220_s14 = scalar_lea.sflag [#allocation4], %s219_s13 }
  0x78   : > { %p300_p5 = pnand %p594_p7, %p505_p12 }
  0x7a   : > { %p301_p8 = pneg %p300_p5 }
  0x7c   : > { %422 = dma.done.wait (%p301_p8), %s220_s14, 128  }
  0x7d   : > { %424 = vsyncadd (%p301_p8), %s220_s14, 4294967168  ;;  %p14_p10 = scmp.ge.s32.totalorder %s476_s12, 4   ;;  %s595_s6 = smov %s431_s7 }
  0x7e   : > { %s596_s7 = smov %s435_s8  ;;  %s597_s8 = smov %s488_s15 }
  0x7f   : > { %s598_s9 = smov %s476_s12  ;;  %16 = sbr.rel (!%p14_p10) target bundleno = 5 (0x5), region = 69 }
  0x84   :  { %226 = vsyncpa [#allocation3], 1 }
  0x85   :  { %228 = vsyncpa [#allocation3 + $0x1], 1 }
  0x86   :  { %229 = vsyncpa [#allocation4], 1 }
  0x87   :  { %231 = vsyncpa [#allocation4 + $0x1], 1 }

</bundles_post_ra>
